<compile_context>
chip_gen: v5e
topology: v5e:2x2
jax: 0.10.0
libtpu: 0.0.40
codegen_flags: <defaults>
</compile_context>

<pallas_src>
import jax
import jax.numpy as jnp
from jax.experimental import pallas as pl
from jax.experimental.pallas import tpu as pltpu

EPS = 1e-5  # PyTorch BatchNorm1d default eps

# Per-block VMEM target. Default double buffering of input + output costs
# ~4x this (~8 MiB): fits v5e's 16 MiB default scoped limit and leaves ample
# headroom under v7x's 64 MiB physical VMEM.
_BLOCK_BYTES = 2 * 1024 * 1024
_MAX_TL = 2048  # largest lane tile to target (sweep point from perf review)
_VMEM_LIMIT = 32 * 1024 * 1024  # explicit scoped limit; covers rare oversize blocks


def _normact_kernel_3d(x_ref, s_ref, t_ref, o_ref):
    """(1, C, TL) block: fused per-channel affine + ReLU, math in f32."""
    x = x_ref[0].astype(jnp.float32)                       # (C, TL)
    # (C, 1) f32 scale/shift broadcast along the lane (TL) axis; pure VPU work.
    y = jnp.maximum(x * s_ref[...] + t_ref[...], 0.0)
    o_ref[0] = y.astype(o_ref.dtype)


def _normact_kernel_2d(x_ref, s_ref, t_ref, o_ref):
    """(BB, C*L) flattened block: affine + ReLU with (1, C*L) f32 params."""
    x = x_ref[...].astype(jnp.float32)
    y = jnp.maximum(x * s_ref[...] + t_ref[...], 0.0)
    o_ref[...] = y.astype(o_ref.dtype)


def normact_forward(x, gamma, beta, mean, var):
    B, C, L = x.shape
    itemsize = jnp.dtype(x.dtype).itemsize

    # Fold eval-mode BatchNorm into a per-channel affine.  Kept in f32 so
    # bf16/fp16 inputs are normalized at full precision (only the final store
    # is cast back to x.dtype inside the kernel).
    scale = (gamma.astype(jnp.float32)
             / jnp.sqrt(var.astype(jnp.float32) + EPS))
    shift = beta.astype(jnp.float32) - mean.astype(jnp.float32) * scale

    cost = pl.CostEstimate(
        flops=3 * B * C * L,                               # mul + add + max
        transcendentals=0,
        bytes_accessed=2 * B * C * L * itemsize + 2 * C * 4,
    )
    cparams_kwargs = dict(vmem_limit_bytes=_VMEM_LIMIT)

    if L >= 128:
        # ---- lane-tiled path: grid over (batch, L-tiles) ----
        tl_budget = max(128, _BLOCK_BYTES // max(1, C * itemsize))
        tl = min(tl_budget, _MAX_TL)
        if L <= tl:
            tl = L                                         # one full-width tile
        else:
            tl = max(128, (tl // 128) * 128)               # lane-dense multiple of 128
        grid = (B, pl.cdiv(L, tl))
        return pl.pallas_call(
            _normact_kernel_3d,
            out_shape=jax.ShapeDtypeStruct((B, C, L), x.dtype),
            grid=grid,
            in_specs=[
                pl.BlockSpec((1, C, tl), lambda b, l: (b, 0, l)),
                # scale/shift: constant block index -> fetched once, stay resident.
                pl.BlockSpec((C, 1), lambda b, l: (0, 0)),
                pl.BlockSpec((C, 1), lambda b, l: (0, 0)),
            ],
            out_specs=pl.BlockSpec((1, C, tl), lambda b, l: (b, 0, l)),
            compiler_params=pltpu.CompilerParams(
                dimension_semantics=("parallel", "parallel"),
                **cparams_kwargs),
            cost_estimate=cost,
        )(x, scale[:, None], shift[:, None])

    # ---- small-L path: flatten (B, C, L) -> (B, C*L), pack batch rows ----
    lane = C * L
    x2 = x.reshape(B, lane)
    scale_f = jnp.broadcast_to(scale[:, None], (C, L)).reshape(1, lane)
    shift_f = jnp.broadcast_to(shift[:, None], (C, L)).reshape(1, lane)

    bb = _BLOCK_BYTES // max(1, lane * itemsize)
    if bb >= B or B <= 8:
        bb = B                                             # full-dim block: always legal
    else:
        bb = max(8, (bb // 8) * 8)                         # sublane-aligned batch tile
    grid = (pl.cdiv(B, bb),)

    out = pl.pallas_call(
        _normact_kernel_2d,
        out_shape=jax.ShapeDtypeStruct((B, lane), x.dtype),
        grid=grid,
        in_specs=[
            pl.BlockSpec((bb, lane), lambda i: (i, 0)),
            pl.BlockSpec((1, lane), lambda i: (0, 0)),
            pl.BlockSpec((1, lane), lambda i: (0, 0)),
        ],
        out_specs=pl.BlockSpec((bb, lane), lambda i: (i, 0)),
        compiler_params=pltpu.CompilerParams(
            dimension_semantics=("parallel",),
            **cparams_kwargs),
        cost_estimate=cost,
    )(x2, scale_f, shift_f)
    return out.reshape(B, C, L)


def normact_reference(x, gamma, beta, mean, var):
    """Pure-JAX replica of eval-mode nn.BatchNorm1d(n) + nn.ReLU on (B, n, L)."""
    g = gamma[None, :, None]
    b = beta[None, :, None]
    m = mean[None, :, None]
    v = var[None, :, None]
    return jax.nn.relu((x - m) / jnp.sqrt(v + EPS) * g + b)


if __name__ == "__main__":
    key = jax.random.PRNGKey(0)
    kx, kg, kb, km, kv, kx2 = jax.random.split(key, 6)

    n = 8
    gamma = jax.random.uniform(kg, (n,), jnp.float32, 0.5, 1.5)
    beta = 0.1 * jax.random.normal(kb, (n,), jnp.float32)
    mean = 0.1 * jax.random.normal(km, (n,), jnp.float32)
    var = jax.random.uniform(kv, (n,), jnp.float32, 0.5, 1.5)

    # Case 1: small-L path (flattened; lane = C*L = 128, lane-dense).
    B, L = 2, 16
    x = jax.random.normal(kx, (B, n, L), jnp.float32)
    out = jax.block_until_ready(normact_forward(x, gamma, beta, mean, var))
    ref = normact_reference(x, gamma, beta, mean, var)
    assert out.shape == (B, n, L), out.shape
    assert jnp.allclose(out, ref, atol=1e-5, rtol=1e-5), float(
        jnp.max(jnp.abs(out - ref)))

    # Case 2: lane-tiled path (L >= 128, grid over batch + L tiles).
    B2, L2 = 2, 256
    x2 = jax.random.normal(kx2, (B2, n, L2), jnp.float32)
    out2 = jax.block_until_ready(normact_forward(x2, gamma, beta, mean, var))
    ref2 = normact_reference(x2, gamma, beta, mean, var)
    assert out2.shape == (B2, n, L2), out2.shape
    assert jnp.allclose(out2, ref2, atol=1e-5, rtol=1e-5), float(
        jnp.max(jnp.abs(out2 - ref2)))

    print("KERNEL_OK")
</pallas_src>

<mosaic_0001>
module attributes {stable_mosaic.version = 11 : i64} {
  func.func @_normact_kernel_2d(%arg0: i32, %arg1: memref<2x128xf32, #tpu.memory_space<vmem>>, %arg2: memref<1x128xf32, #tpu.memory_space<vmem>>, %arg3: memref<1x128xf32, #tpu.memory_space<vmem>>, %arg4: memref<2x128xf32, #tpu.memory_space<vmem>>) attributes {dimension_semantics = [#tpu.dimension_semantics<parallel>], iteration_bounds = array<i64: 1>, scalar_prefetch = 0 : i64, scratch_operands = 0 : i64, tpu.core_type = #tpu.core_type<tc>, window_params = [{transform_indices = @transform_0, window_bounds = array<i64: 2, 128>}, {pipeline_mode = #tpu.pipeline_mode<synchronous>, transform_indices = @transform_1, window_bounds = array<i64: 1, 128>}, {pipeline_mode = #tpu.pipeline_mode<synchronous>, transform_indices = @transform_2, window_bounds = array<i64: 1, 128>}, {transform_indices = @transform_3, window_bounds = array<i64: 2, 128>}]} {
    %c0 = arith.constant 0 : index
    %c0_0 = arith.constant 0 : index
    %0 = vector.load %arg1[%c0, %c0_0] : memref<2x128xf32, #tpu.memory_space<vmem>>, vector<2x128xf32>
    %c0_1 = arith.constant 0 : index
    %c0_2 = arith.constant 0 : index
    %1 = vector.load %arg2[%c0_1, %c0_2] : memref<1x128xf32, #tpu.memory_space<vmem>>, vector<1x128xf32>
    %2 = vector.broadcast %1 : vector<1x128xf32> to vector<2x128xf32>
    %3 = arith.mulf %0, %2 : vector<2x128xf32>
    %c0_3 = arith.constant 0 : index
    %c0_4 = arith.constant 0 : index
    %4 = vector.load %arg3[%c0_3, %c0_4] : memref<1x128xf32, #tpu.memory_space<vmem>>, vector<1x128xf32>
    %5 = vector.broadcast %4 : vector<1x128xf32> to vector<2x128xf32>
    %6 = arith.addf %3, %5 : vector<2x128xf32>
    %cst = arith.constant 0.000000e+00 : f32
    %7 = vector.broadcast %cst : f32 to vector<2x128xf32>
    %8 = arith.maximumf %6, %7 : vector<2x128xf32>
    %c0_5 = arith.constant 0 : index
    %c0_6 = arith.constant 0 : index
    %9 = vector.load %arg4[%c0_5, %c0_6] : memref<2x128xf32, #tpu.memory_space<vmem>>, vector<2x128xf32>
    tpu.vector_store %arg4[%c0_5, %c0_6], %8 {strides = array<i32>} : memref<2x128xf32, #tpu.memory_space<vmem>>, vector<2x128xf32>,
    return
  }
  func.func @transform_0(%arg0: i32) -> (i32, i32) {
    %c0_i32 = arith.constant 0 : i32
    %c0_i32_0 = arith.constant 0 : i32
    return %arg0, %c0_i32 : i32, i32
  }
  func.func @transform_1(%arg0: i32) -> (i32, i32) {
    %c0_i32 = arith.constant 0 : i32
    %c0_i32_0 = arith.constant 0 : i32
    %c0_i32_1 = arith.constant 0 : i32
    return %c0_i32, %c0_i32_0 : i32, i32
  }
  func.func @transform_2(%arg0: i32) -> (i32, i32) {
    %c0_i32 = arith.constant 0 : i32
    %c0_i32_0 = arith.constant 0 : i32
    %c0_i32_1 = arith.constant 0 : i32
    return %c0_i32, %c0_i32_0 : i32, i32
  }
  func.func @transform_3(%arg0: i32) -> (i32, i32) {
    %c0_i32 = arith.constant 0 : i32
    %c0_i32_0 = arith.constant 0 : i32
    return %arg0, %c0_i32 : i32, i32
  }
}

</mosaic_0001>

<bundles_post_ra>
// kernel: tpu_custom_call.1
= control target key start
LH: loop header
LB: loop body
LE: loop exit
PB: predicated region body
PF: predicated region fallthrough
CT: control target
= control target key end

     0   :  { %8 = vsyncpa [#allocation3], 0  ;;  %s192_s0 = inlined_call_operand.hbm [shape: f32[2,128], index: 0, kind: input, shape index: {}]   ;;  %s193_s1 = inlined_call_operand.hbm [shape: f32[1,128], index: 1, kind: input, shape index: {}]   ;;  %s194_s2 = inlined_call_operand.vmem [shape: f32[1,128], index: 2, kind: input, shape index: {}]   ;;  %s195_s3 = inlined_call_operand.hbm [shape: f32[2,128], index: 3, kind: output, shape index: {}]  }
   0x1   :  { %9 = vsyncpa [#allocation6], 0 }
   0x2   :  { %10 = vsyncpa [#allocation4], 0  ;;  %s16_s14 = sshll.u32 %s192_s0, 4  ;;  %s157_s15 = smov [#allocation2]   ;;  %s17_s14 = int_to_ptr.hbm [resolvable:$true] %s16_s14 }
   0x3   :  { %s18_s16 = sshll.u32 %s157_s15, 4  ;;  %s27_s19 = sshll.u32 %s193_s1, 4  ;;  %s19_s16 = int_to_ptr.vmem [resolvable:$true] %s18_s16  ;;  %s28_s19 = int_to_ptr.hbm [resolvable:$true] %s27_s19 }
   0x4   :  { %21 = dma.hbm_to_vmem [thread:$0]  %s17_s14, 32, %s19_s16, [#allocation3]  }
   0x5   :  { %s158_s20 = smov [#allocation5]  }
   0x6   :  { %s29_s21 = sshll.u32 %s158_s20, 4  ;;  %s30_s21 = int_to_ptr.vmem [resolvable:$true] %s29_s21 }
   0x7   :  { %32 = dma.hbm_to_vmem [thread:$0]  %s28_s19, 16, %s30_s21, [#allocation6]  }
   0x8   :  { %151 = dma.done.wait [#allocation3], 32  }
   0x9   :  { %152 = vsyncadd [#allocation3], 4294967264 }
   0xa   :  { %153 = dma.done.wait [#allocation6], 16  }
   0xb   :  { %154 = vsyncadd [#allocation6], 4294967280  ;;  %v43_v0 = vld [vmem:[#allocation2] sm:$0x3]  ;;  %v77_v1 = vld [vmem:[#allocation5] ss:$0 sm:$0xff] }
   0xc   :  { %v78_v2 = vld [vmem:[%s194_s2] ss:$0 sm:$0xff]  ;;  %v48_v3 = vmul.f32 %v77_v1, %v43_v0  ;;  %s159_s23 = smov [#allocation7]   ;;  %s63_s26 = sshll.u32 %s195_s3, 4  ;;  %s64_s26 = int_to_ptr.hbm [resolvable:$true] %s63_s26 }
   0xd   :  { %s61_s24 = sshll.u32 %s159_s23, 4  ;;  %s62_s24 = int_to_ptr.vmem [resolvable:$true] %s61_s24 }
   0xe   :  { %v53_v4 = vadd.f32 %v78_v2, %v48_v3 }
  0x10   :  { %v54_v5 = vmax.f32 %v53_v4, 0.0 }
  0x12   :  { %55 = vst [vmem:[#allocation7] sm:$0x3] %v54_v5 }
  0x13   :  { %66 = dma.vmem_to_hbm [thread:$0]  %s62_s24, 32, %s64_s26, [#allocation4]  }
  0x14   :  { %155 = dma.done.wait [#allocation4], 32  }
  0x15   :  { %156 = vsyncadd [#allocation4], 4294967264 }
  0x16   :  { %71 = vsyncpa [#allocation3], 1 }
  0x17   :  { %72 = vsyncpa [#allocation6], 1 }
  0x18   :  { %73 = vsyncpa [#allocation4], 1 }

</bundles_post_ra>
